<compile_context>
chip_gen: v5e
topology: v5e:2x2
jax: 0.10.0
libtpu: 0.0.40
codegen_flags: <defaults>
</compile_context>

<pallas_src>
import functools

import jax
import jax.numpy as jnp
from jax.experimental import pallas as pl
from jax.experimental.pallas import tpu as pltpu

_LANE = 128
_W_CANDIDATES = (2048, 1024, 512, 256, 128)
_PALLAS_MIN_BYTES = 256 * 1024  # below this, fused XLA elementwise wins


def _sq_leaky_relu_kernel(x_ref, o_ref, *, negative_slope):
    x = x_ref[...]
    y = jnp.where(x >= 0, x, x * negative_slope)
    o_ref[...] = y * y


@functools.lru_cache(maxsize=None)
def _vmem_budget():
    """Returns (target_tile_bytes_per_buffer, vmem_limit_bytes), generation-aware."""
    try:
        cap = int(pltpu.get_tpu_info().vmem_capacity_bytes)
    except Exception:
        cap = 64 * 1024 * 1024  # conservative: assume v7x-sized VMEM
    if cap >= 128 * 1024 * 1024:
        # v5e / v6e: 128 MiB physical VMEM -> big tiles, explicitly raised limit.
        return 8 * 1024 * 1024, 64 * 1024 * 1024
    # v7x: 64 MiB physical / 32 MiB scoped. 4 live buffers * 6 MiB = 24 MiB.
    return 6 * 1024 * 1024, 32 * 1024 * 1024


def _sublane_multiple(itemsize):
    # f32 -> 8, bf16/f16 -> 16, int8/fp8 -> 32: keeps packed tiles full and the
    # ragged last block's stores unmasked whenever possible.
    return max(8, 32 // itemsize)


def _choose_block_rows(rows, bytes_per_row, sub, target_tile_bytes):
    block_rows = max(sub, (target_tile_bytes // bytes_per_row) // sub * sub)
    block_rows = min(block_rows, rows)
    # Keep the grid >= 2 steps (so v7x's two TensorCores both get work); prefer
    # >= 4 steps as long as each block stays >= ~1 MiB.
    for min_grid in (4, 2):
        cap = (rows // min_grid) // sub * sub
        if cap >= sub and (min_grid == 2 or cap * bytes_per_row >= (1 << 20)):
            block_rows = min(block_rows, cap)
            break
    return block_rows


def squared_leaky_relu(x, negative_slope=0.01, *, force_pallas=False):
    """Elementwise (LeakyReLU(x, negative_slope))**2 via a Pallas TPU kernel."""
    dtype = x.dtype
    if not jnp.issubdtype(dtype, jnp.floating):
        raise TypeError(f"squared_leaky_relu expects a floating dtype, got {dtype}")
    negative_slope = float(negative_slope)

    orig_shape = x.shape
    n = x.size
    itemsize = jnp.dtype(dtype).itemsize

    # Fast path: tiny tensors are dominated by kernel-launch / pipeline-prologue
    # cost; XLA's fused elementwise is a single pass and faster there.
    if n == 0 or (not force_pallas and n * itemsize < _PALLAS_MIN_BYTES):
        y = jnp.where(x >= 0, x, x * negative_slope)
        return y * y

    target_tile_bytes, vmem_limit = _vmem_budget()
    sub = _sublane_multiple(itemsize)
    kernel = functools.partial(_sq_leaky_relu_kernel, negative_slope=negative_slope)
    compiler_params = pltpu.CompilerParams(
        dimension_semantics=("parallel",),
        vmem_limit_bytes=vmem_limit,
    )
    cost = pl.CostEstimate(
        flops=3 * n, transcendentals=0, bytes_accessed=2 * n * itemsize
    )

    flat = x.reshape(-1)

    # Preferred path: widest lane width W (multiple of 128) that divides n, so the
    # reshape to a lane-dense (rows, W) slab is free (no pad / copy needed).
    W = next((c for c in _W_CANDIDATES if n % c == 0), None)
    if W is not None:
        rows = n // W
        x2d = flat.reshape(rows, W)
        block_rows = _choose_block_rows(rows, W * itemsize, sub, target_tile_bytes)
        out2d = pl.pallas_call(
            kernel,
            out_shape=jax.ShapeDtypeStruct((rows, W), dtype),
            grid=(pl.cdiv(rows, block_rows),),
            in_specs=[pl.BlockSpec((block_rows, W), lambda i: (i, 0))],
            out_specs=pl.BlockSpec((block_rows, W), lambda i: (i, 0)),
            compiler_params=compiler_params,
            cost_estimate=cost,
        )(x2d)
        return out2d.reshape(orig_shape)

    # Ragged fallback (n not a multiple of 128): stream the flat array as a (1, n)
    # slab with lane-blocks; Pallas masks the ragged last block.  No pad /
    # concatenate / slice -> no extra HBM pass.  A (1, n) array only fills sublane
    # 0 of each (8, 128) VMEM tile (~32 physical bytes per element), so shrink the
    # logical tile accordingly to respect the VMEM budget.
    x2d = flat.reshape(1, n)
    chunk = 8 * _LANE
    block_elems = max(chunk, (target_tile_bytes // 32) // chunk * chunk)
    if n >= chunk:
        block_elems = min(block_elems, (n // chunk) * chunk)
        if n >= 2 * chunk:
            # Keep >= 2 grid steps so both v7x TensorCores get work.
            block_elems = min(block_elems, max(chunk, (n // 2) // chunk * chunk))
    else:
        block_elems = n  # single full-extent block
    out2d = pl.pallas_call(
        kernel,
        out_shape=jax.ShapeDtypeStruct((1, n), dtype),
        grid=(pl.cdiv(n, block_elems),),
        in_specs=[pl.BlockSpec((1, block_elems), lambda i: (0, i))],
        out_specs=pl.BlockSpec((1, block_elems), lambda i: (0, i)),
        compiler_params=compiler_params,
        cost_estimate=cost,
    )(x2d)
    return out2d.reshape(orig_shape)


def _reference(x, negative_slope=0.01):
    y = jnp.where(x >= 0, x, x * negative_slope)
    return y * y


if __name__ == "__main__":
    slope = 0.01
    key = jax.random.PRNGKey(0)

    # Primary test: NCHW activation input as in the module's usage.  Force the
    # Pallas path so the kernel itself is exercised despite the tiny size.
    x = jax.random.normal(key, (2, 4, 16, 16), dtype=jnp.float32)
    ref = _reference(x, slope)
    out = jax.block_until_ready(squared_leaky_relu(x, slope, force_pallas=True))
    assert out.shape == x.shape and out.dtype == x.dtype
    assert jnp.allclose(out, ref, atol=1e-6, rtol=1e-6)

    # Default dispatch on the same tiny tensor takes the fused-XLA fast path.
    out_fast = jax.block_until_ready(squared_leaky_relu(x, slope))
    assert jnp.allclose(out_fast, ref, atol=1e-6, rtol=1e-6)

    # Medium tensor: exercises the multi-block lane-dense 2D streaming path
    # (grid >= 2, generation-aware tiles).
    xm = jax.random.normal(jax.random.PRNGKey(0), (8, 8, 64, 64), dtype=jnp.float32)
    outm = jax.block_until_ready(squared_leaky_relu(xm, slope))
    assert outm.shape == xm.shape and outm.dtype == xm.dtype
    assert jnp.allclose(outm, _reference(xm, slope), atol=1e-6, rtol=1e-6)

    # Awkward size (3*5*7*11 = 1155 elements, not a multiple of 128): default
    # takes the fast path; forcing Pallas exercises the pad-free ragged path.
    xa = jax.random.normal(jax.random.PRNGKey(0), (3, 5, 7, 11), dtype=jnp.float32)
    refa = _reference(xa, 0.2)
    outa = jax.block_until_ready(squared_leaky_relu(xa, 0.2))
    assert jnp.allclose(outa, refa, atol=1e-6, rtol=1e-6)
    outa_pl = jax.block_until_ready(squared_leaky_relu(xa, 0.2, force_pallas=True))
    assert outa_pl.shape == xa.shape and outa_pl.dtype == xa.dtype
    assert jnp.allclose(outa_pl, refa, atol=1e-6, rtol=1e-6)

    print("KERNEL_OK")
</pallas_src>

<mosaic_0001>
module attributes {stable_mosaic.version = 11 : i64} {
  func.func @_sq_leaky_relu_kernel(%arg0: i32, %arg1: memref<1x2048xf32, #tpu.memory_space<vmem>>, %arg2: memref<1x2048xf32, #tpu.memory_space<vmem>>) attributes {dimension_semantics = [#tpu.dimension_semantics<parallel>], iteration_bounds = array<i64: 1>, scalar_prefetch = 0 : i64, scratch_operands = 0 : i64, tpu.core_type = #tpu.core_type<tc>, window_params = [{transform_indices = @transform_0, window_bounds = array<i64: 1, 2048>}, {transform_indices = @transform_1, window_bounds = array<i64: 1, 2048>}]} {
    %c0 = arith.constant 0 : index
    %c0_0 = arith.constant 0 : index
    %0 = vector.load %arg1[%c0, %c0_0] : memref<1x2048xf32, #tpu.memory_space<vmem>>, vector<1x2048xf32>
    %cst = arith.constant 0.000000e+00 : f32
    %1 = vector.broadcast %cst : f32 to vector<1x2048xf32>
    %2 = arith.cmpf oge, %0, %1 : vector<1x2048xf32>
    %cst_1 = arith.constant 0.00999999977 : f32
    %3 = vector.broadcast %cst_1 : f32 to vector<1x2048xf32>
    %4 = arith.mulf %0, %3 : vector<1x2048xf32>
    %5 = arith.select %2, %0, %4 : vector<1x2048xi1>, vector<1x2048xf32>
    %6 = arith.mulf %5, %5 : vector<1x2048xf32>
    %c0_2 = arith.constant 0 : index
    %c0_3 = arith.constant 0 : index
    %7 = vector.load %arg2[%c0_2, %c0_3] : memref<1x2048xf32, #tpu.memory_space<vmem>>, vector<1x2048xf32>
    tpu.vector_store %arg2[%c0_2, %c0_3], %6 {strides = array<i32>} : memref<1x2048xf32, #tpu.memory_space<vmem>>, vector<1x2048xf32>,
    return
  }
  func.func @transform_0(%arg0: i32) -> (i32, i32) {
    %c0_i32 = arith.constant 0 : i32
    %c0_i32_0 = arith.constant 0 : i32
    return %arg0, %c0_i32 : i32, i32
  }
  func.func @transform_1(%arg0: i32) -> (i32, i32) {
    %c0_i32 = arith.constant 0 : i32
    %c0_i32_0 = arith.constant 0 : i32
    return %arg0, %c0_i32 : i32, i32
  }
}

</mosaic_0001>

<bundles_post_ra>
// kernel: tpu_custom_call.1
= control target key start
LH: loop header
LB: loop body
LE: loop exit
PB: predicated region body
PF: predicated region fallthrough
CT: control target
= control target key end

     0   :  { %6 = vsyncpa [#allocation3], 0  ;;  %s124_s0 = inlined_call_operand.hbm [shape: f32[1,2048], index: 0, kind: input, shape index: {}]   ;;  %s125_s1 = inlined_call_operand.hbm [shape: f32[1,2048], index: 1, kind: output, shape index: {}]  }
   0x1   :  { %7 = vsyncpa [#allocation4], 0  ;;  %s13_s8 = sshll.u32 %s124_s0, 4  ;;  %s106_s9 = smov [#allocation2]   ;;  %s14_s8 = int_to_ptr.hbm [resolvable:$true] %s13_s8 }
   0x2   :  { %s15_s10 = sshll.u32 %s106_s9, 4  ;;  %s16_s10 = int_to_ptr.vmem [resolvable:$true] %s15_s10 }
   0x3   :  { %18 = dma.hbm_to_vmem [thread:$0]  %s14_s8, 256, %s16_s10, [#allocation3]  }
   0x4   :  { %102 = dma.done.wait [#allocation3], 256  }
   0x5   :  { %103 = vsyncadd [#allocation3], 4294967040  ;;  %v23_v0 = vld [vmem:[#allocation2] sm:$0xff]  ;;  %v24_v1 = vld [vmem:[#allocation2 + $0x8] sm:$0xff]  ;;  %s107_s11 = smov [#allocation5]   ;;  %s42_s15 = sshll.u32 %s125_s1, 4  ;;  %s43_s15 = int_to_ptr.hbm [resolvable:$true] %s42_s15 }
   0x6   :  { %vm25_vm0 = vcmp.ge.f32.partialorder %v23_v0, 0.0  ;;  %v27_v2 = vmul.f32 0.01, %v23_v0  ;;  %vm26_vm1 = vcmp.ge.f32.partialorder %v24_v1, 0.0  ;;  %v28_v3 = vmul.f32 0.01, %v24_v1 }
   0x7   :  { %s40_s12 = sshll.u32 %s107_s11, 4  ;;  %s41_s12 = int_to_ptr.vmem [resolvable:$true] %s40_s12 }
   0x8   :  { %v29_v4 = vsel %vm25_vm0, %v23_v0, %v27_v2  ;;  %v30_v5 = vsel %vm26_vm1, %v24_v1, %v28_v3 }
   0x9   :  { %v31_v6 = vmul.f32 %v29_v4, %v29_v4  ;;  %v32_v7 = vmul.f32 %v30_v5, %v30_v5 }
   0xb   :  { %33 = vst [vmem:[#allocation5] sm:$0xff] %v31_v6 }
   0xc   :  { %34 = vst [vmem:[#allocation5 + $0x8] sm:$0xff] %v32_v7 }
   0xd   :  { %45 = dma.vmem_to_hbm [thread:$0]  %s41_s12, 256, %s43_s15, [#allocation4]  }
   0xe   :  { %104 = dma.done.wait [#allocation4], 256  }
   0xf   :  { %105 = vsyncadd [#allocation4], 4294967040 }
  0x10   :  { %50 = vsyncpa [#allocation3], 1 }
  0x11   :  { %51 = vsyncpa [#allocation4], 1 }

</bundles_post_ra>
